<compile_context>
chip_gen: v7x
topology: tpu7x:2x2x1
jax: 0.10.0
libtpu: 0.0.40
codegen_flags: <defaults>
</compile_context>

<pallas_src>
import jax
import jax.numpy as jnp
from jax.experimental import pallas as pl
from jax.experimental.pallas import tpu as pltpu


def _disc_kernel(x_ref, w1_ref, b1_ref, w2_ref, b2_ref, w3_ref, b3_ref, o_ref):
    # Layer 1: Linear(256, 256) + ReLU  (bf16 MXU operands, f32 accumulation)
    x = x_ref[...].astype(jnp.bfloat16)        # no-op if input already bf16
    h1 = jnp.dot(x, w1_ref[...], preferred_element_type=jnp.float32)
    h1 = jnp.maximum(h1 + b1_ref[...], 0.0)

    # Layer 2: Linear(256, 256) + ReLU
    h2 = jnp.dot(h1.astype(jnp.bfloat16), w2_ref[...],
                 preferred_element_type=jnp.float32)
    h2 = jnp.maximum(h2 + b2_ref[...], 0.0)

    # Layer 3: Linear(256, 1) as VPU mul + reduction (off the MXU), emitted as
    # a lane-packed (1, TB) row: multiply by the weight row, transpose the
    # (TB, 256) product on the XLU, reduce over sublanes.  All f32.
    z = h2 * w3_ref[...]                       # (TB, 256) f32
    z_t = jnp.transpose(z)                     # (256, TB) — XLU, ~free slot
    logit_row = jnp.sum(z_t, axis=0, keepdims=True) + b3_ref[...]   # (1, TB)
    o_ref[...] = jax.nn.sigmoid(logit_row).astype(o_ref.dtype)


def prepare_params(params):
    """One-time param prep (casting / reshaping) — hoisted out of the forward.

    Input `params` are stored as [in, out] (i.e. PyTorch weight.T)."""
    w1, b1, w2, b2, w3, b3 = params
    return (
        w1.astype(jnp.bfloat16),                       # (256, 256) bf16
        b1.reshape(1, -1).astype(jnp.float32),         # (1, 256)   f32
        w2.astype(jnp.bfloat16),                       # (256, 256) bf16
        b2.reshape(1, -1).astype(jnp.float32),         # (1, 256)   f32
        w3.reshape(1, -1).astype(jnp.float32),         # (1, 256)   f32 row
        b3.reshape(1, 1).astype(jnp.float32),          # (1, 1)     f32
    )


def _round_up(x, m):
    return ((x + m - 1) // m) * m


def discriminator_forward(h, prepared_params, *, batch_tile=512):
    """h: [B, input_size] float32 (or bfloat16).  Returns [B, 1] float32."""
    w1, b1, w2, b2, w3, b3 = prepared_params
    B, D = h.shape
    H = w1.shape[1]          # 256

    # Batch tiling: weights stay VMEM-resident (constant index maps); the
    # activation DMA pipelines with compute.  Small batches run as a single
    # sublane-aligned block; large batches get >= 2 grid steps (megacore).
    if B <= batch_tile:
        TB = max(_round_up(B, 8), 8)
        nb = 1
    else:
        TB = batch_tile
        nb = pl.cdiv(B, TB)
    B_pad = nb * TB
    if B_pad != B:
        h = jnp.pad(h, ((0, B_pad - B), (0, 0)))

    out_row = pl.pallas_call(
        _disc_kernel,
        out_shape=jax.ShapeDtypeStruct((1, B_pad), jnp.float32),
        grid=(nb,),
        in_specs=[
            pl.BlockSpec((TB, D), lambda i: (i, 0)),   # activations: per-tile
            pl.BlockSpec((D, H), lambda i: (0, 0)),    # w1: resident
            pl.BlockSpec((1, H), lambda i: (0, 0)),    # b1
            pl.BlockSpec((H, H), lambda i: (0, 0)),    # w2: resident
            pl.BlockSpec((1, H), lambda i: (0, 0)),    # b2
            pl.BlockSpec((1, H), lambda i: (0, 0)),    # w3 row
            pl.BlockSpec((1, 1), lambda i: (0, 0)),    # b3 scalar
        ],
        # Lane-packed output: each grid step writes a dense (1, TB) lane block.
        out_specs=pl.BlockSpec((1, TB), lambda i: (0, i)),
        compiler_params=pltpu.CompilerParams(
            dimension_semantics=("parallel",),
            vmem_limit_bytes=32 << 20,
        ),
    )(h, w1, b1, w2, b2, w3, b3)

    # Contiguous slice + reshape back to the module's [B, 1] output.
    return out_row[0, :B].reshape(B, 1)


def init_params(key, input_size=256):
    """Deterministic init mimicking PyTorch Linear default U(-1/sqrt(in), 1/sqrt(in))."""
    ks = jax.random.split(key, 6)

    def lin(kw, kb, fan_in, fan_out):
        bound = 1.0 / jnp.sqrt(fan_in)
        # weight stored as [in, out] (i.e. PyTorch weight.T)
        w = jax.random.uniform(kw, (fan_in, fan_out), jnp.float32, -bound, bound)
        b = jax.random.uniform(kb, (fan_out,), jnp.float32, -bound, bound)
        return w, b

    w1, b1 = lin(ks[0], ks[1], input_size, 256)
    w2, b2 = lin(ks[2], ks[3], 256, 256)
    w3, b3 = lin(ks[4], ks[5], 256, 1)
    return (w1, b1, w2, b2, w3, b3)


def _reference_f32(h, params):
    """Pure-f32 reference (original module math)."""
    w1, b1, w2, b2, w3, b3 = params
    y = jnp.maximum(h @ w1 + b1, 0.0)
    y = jnp.maximum(y @ w2 + b2, 0.0)
    return jax.nn.sigmoid(y @ w3 + b3)


def _reference_bf16(h, prepared_params):
    """Reference matching the kernel's bf16-operand / f32-accumulate math."""
    w1, b1, w2, b2, w3, b3 = prepared_params
    y = jnp.dot(h.astype(jnp.bfloat16), w1, preferred_element_type=jnp.float32)
    y = jnp.maximum(y + b1, 0.0)
    y = jnp.dot(y.astype(jnp.bfloat16), w2, preferred_element_type=jnp.float32)
    y = jnp.maximum(y + b2, 0.0)
    logit = jnp.sum(y * w3, axis=-1, keepdims=True) + b3
    return jax.nn.sigmoid(logit)


def _check(h, params, prepared, tag):
    y = discriminator_forward(h, prepared)
    y = jax.block_until_ready(y)
    assert y.shape == (h.shape[0], 1), (tag, y.shape)

    # Tight check against a reference mirroring the kernel's precision.
    y_ref_bf16 = _reference_bf16(h, prepared)
    err_bf16 = jnp.max(jnp.abs(y - y_ref_bf16))
    assert jnp.allclose(y, y_ref_bf16, atol=2e-3, rtol=2e-3), (
        f"{tag}: bf16-matched max abs err = {err_bf16}"
    )

    # Looser check against the full-f32 module math.
    y_ref_f32 = _reference_f32(h, params)
    err_f32 = jnp.max(jnp.abs(y - y_ref_f32))
    assert jnp.allclose(y, y_ref_f32, atol=3e-2, rtol=3e-2), (
        f"{tag}: f32 max abs err = {err_f32}"
    )
    return y


if __name__ == "__main__":
    key = jax.random.PRNGKey(0)
    k_h, k_h2, k_p = jax.random.split(key, 3)

    INPUT_SIZE = 256
    params = init_params(k_p, INPUT_SIZE)
    prepared = prepare_params(params)      # one-time prep, not per-call

    # Small batch (single-tile path).
    h_small = jax.random.normal(k_h, (8, INPUT_SIZE), jnp.float32)
    _check(h_small, params, prepared, "small")

    # Larger, non-multiple batch (multi-tile + padding path, nb >= 2).
    h_large = jax.random.normal(k_h2, (1000, INPUT_SIZE), jnp.float32)
    _check(h_large, params, prepared, "large")

    print("KERNEL_OK")
</pallas_src>

<mosaic_0001>
module attributes {stable_mosaic.version = 11 : i64} {
  func.func @_disc_kernel(%arg0: i32, %arg1: memref<8x256xf32, #tpu.memory_space<vmem>>, %arg2: memref<256x256xbf16, #tpu.memory_space<vmem>>, %arg3: memref<1x256xf32, #tpu.memory_space<vmem>>, %arg4: memref<256x256xbf16, #tpu.memory_space<vmem>>, %arg5: memref<1x256xf32, #tpu.memory_space<vmem>>, %arg6: memref<1x256xf32, #tpu.memory_space<vmem>>, %arg7: memref<1x1xf32, #tpu.memory_space<vmem>>, %arg8: memref<1x8xf32, #tpu.memory_space<vmem>>) attributes {dimension_semantics = [#tpu.dimension_semantics<parallel>], iteration_bounds = array<i64: 1>, scalar_prefetch = 0 : i64, scratch_operands = 0 : i64, tpu.core_type = #tpu.core_type<tc>, window_params = [{transform_indices = @transform_0, window_bounds = array<i64: 8, 256>}, {pipeline_mode = #tpu.pipeline_mode<synchronous>, transform_indices = @transform_1, window_bounds = array<i64: 256, 256>}, {pipeline_mode = #tpu.pipeline_mode<synchronous>, transform_indices = @transform_2, window_bounds = array<i64: 1, 256>}, {pipeline_mode = #tpu.pipeline_mode<synchronous>, transform_indices = @transform_3, window_bounds = array<i64: 256, 256>}, {pipeline_mode = #tpu.pipeline_mode<synchronous>, transform_indices = @transform_4, window_bounds = array<i64: 1, 256>}, {pipeline_mode = #tpu.pipeline_mode<synchronous>, transform_indices = @transform_5, window_bounds = array<i64: 1, 256>}, {pipeline_mode = #tpu.pipeline_mode<synchronous>, transform_indices = @transform_6, window_bounds = array<i64: 1, 1>}, {transform_indices = @transform_7, window_bounds = array<i64: 1, 8>}]} {
    %c0 = arith.constant 0 : index
    %c0_0 = arith.constant 0 : index
    %0 = vector.load %arg1[%c0, %c0_0] : memref<8x256xf32, #tpu.memory_space<vmem>>, vector<8x256xf32>
    %1 = arith.truncf %0 : vector<8x256xf32> to vector<8x256xbf16>
    %c0_1 = arith.constant 0 : index
    %c0_2 = arith.constant 0 : index
    %2 = vector.load %arg2[%c0_1, %c0_2] : memref<256x256xbf16, #tpu.memory_space<vmem>>, vector<256x256xbf16>
    %cst = arith.constant dense<0.000000e+00> : vector<8x256xf32>
    %3 = tpu.matmul %1, %2, %cst {dimension_numbers = #tpu.dot_dimension_numbers<[1], [0], [0], [1], [0, 0, 1, 1], [], []>} : vector<8x256xbf16>, vector<256x256xbf16>, vector<8x256xf32> -> vector<8x256xf32>
    %c0_3 = arith.constant 0 : index
    %c0_4 = arith.constant 0 : index
    %4 = vector.load %arg3[%c0_3, %c0_4] : memref<1x256xf32, #tpu.memory_space<vmem>>, vector<1x256xf32>
    %5 = vector.broadcast %4 : vector<1x256xf32> to vector<8x256xf32>
    %6 = arith.addf %3, %5 : vector<8x256xf32>
    %cst_5 = arith.constant 0.000000e+00 : f32
    %7 = vector.broadcast %cst_5 : f32 to vector<8x256xf32>
    %8 = arith.maximumf %6, %7 : vector<8x256xf32>
    %9 = arith.truncf %8 : vector<8x256xf32> to vector<8x256xbf16>
    %c0_6 = arith.constant 0 : index
    %c0_7 = arith.constant 0 : index
    %10 = vector.load %arg4[%c0_6, %c0_7] : memref<256x256xbf16, #tpu.memory_space<vmem>>, vector<256x256xbf16>
    %cst_8 = arith.constant dense<0.000000e+00> : vector<8x256xf32>
    %11 = tpu.matmul %9, %10, %cst_8 {dimension_numbers = #tpu.dot_dimension_numbers<[1], [0], [0], [1], [0, 0, 1, 1], [], []>} : vector<8x256xbf16>, vector<256x256xbf16>, vector<8x256xf32> -> vector<8x256xf32>
    %c0_9 = arith.constant 0 : index
    %c0_10 = arith.constant 0 : index
    %12 = vector.load %arg5[%c0_9, %c0_10] : memref<1x256xf32, #tpu.memory_space<vmem>>, vector<1x256xf32>
    %13 = vector.broadcast %12 : vector<1x256xf32> to vector<8x256xf32>
    %14 = arith.addf %11, %13 : vector<8x256xf32>
    %cst_11 = arith.constant 0.000000e+00 : f32
    %15 = vector.broadcast %cst_11 : f32 to vector<8x256xf32>
    %16 = arith.maximumf %14, %15 : vector<8x256xf32>
    %c0_12 = arith.constant 0 : index
    %c0_13 = arith.constant 0 : index
    %17 = vector.load %arg6[%c0_12, %c0_13] : memref<1x256xf32, #tpu.memory_space<vmem>>, vector<1x256xf32>
    %18 = vector.broadcast %17 : vector<1x256xf32> to vector<8x256xf32>
    %19 = arith.mulf %16, %18 : vector<8x256xf32>
    %20 = tpu.transpose %19, [1, 0] : vector<8x256xf32> -> vector<256x8xf32>
    %cst_14 = arith.constant dense<0.000000e+00> : vector<8xf32>
    %21 = vector.multi_reduction <add>, %20, %cst_14 [0] : vector<256x8xf32> to vector<8xf32>
    %22 = vector.shape_cast %21 : vector<8xf32> to vector<1x8xf32>
    %c0_15 = arith.constant 0 : index
    %c0_16 = arith.constant 0 : index
    %23 = vector.load %arg7[%c0_15, %c0_16] : memref<1x1xf32, #tpu.memory_space<vmem>>, vector<1x1xf32>
    %24 = vector.broadcast %23 : vector<1x1xf32> to vector<1x8xf32>
    %25 = arith.addf %22, %24 : vector<1x8xf32>
    %26 = arith.negf %25 : vector<1x8xf32>
    %27 = math.exp %26 : vector<1x8xf32>
    %cst_17 = arith.constant 1.000000e+00 : f32
    %28 = vector.broadcast %cst_17 : f32 to vector<1x8xf32>
    %29 = arith.addf %28, %27 : vector<1x8xf32>
    %30 = arith.divf %28, %29 : vector<1x8xf32>
    %c0_18 = arith.constant 0 : index
    %c0_19 = arith.constant 0 : index
    %31 = vector.load %arg8[%c0_18, %c0_19] : memref<1x8xf32, #tpu.memory_space<vmem>>, vector<1x8xf32>
    tpu.vector_store %arg8[%c0_18, %c0_19], %30 {strides = array<i32>} : memref<1x8xf32, #tpu.memory_space<vmem>>, vector<1x8xf32>,
    return
  }
  func.func @transform_0(%arg0: i32) -> (i32, i32) {
    %c0_i32 = arith.constant 0 : i32
    %c0_i32_0 = arith.constant 0 : i32
    return %arg0, %c0_i32 : i32, i32
  }
  func.func @transform_1(%arg0: i32) -> (i32, i32) {
    %c0_i32 = arith.constant 0 : i32
    %c0_i32_0 = arith.constant 0 : i32
    %c0_i32_1 = arith.constant 0 : i32
    return %c0_i32, %c0_i32_0 : i32, i32
  }
  func.func @transform_2(%arg0: i32) -> (i32, i32) {
    %c0_i32 = arith.constant 0 : i32
    %c0_i32_0 = arith.constant 0 : i32
    %c0_i32_1 = arith.constant 0 : i32
    return %c0_i32, %c0_i32_0 : i32, i32
  }
  func.func @transform_3(%arg0: i32) -> (i32, i32) {
    %c0_i32 = arith.constant 0 : i32
    %c0_i32_0 = arith.constant 0 : i32
    %c0_i32_1 = arith.constant 0 : i32
    return %c0_i32, %c0_i32_0 : i32, i32
  }
  func.func @transform_4(%arg0: i32) -> (i32, i32) {
    %c0_i32 = arith.constant 0 : i32
    %c0_i32_0 = arith.constant 0 : i32
    %c0_i32_1 = arith.constant 0 : i32
    return %c0_i32, %c0_i32_0 : i32, i32
  }
  func.func @transform_5(%arg0: i32) -> (i32, i32) {
    %c0_i32 = arith.constant 0 : i32
    %c0_i32_0 = arith.constant 0 : i32
    %c0_i32_1 = arith.constant 0 : i32
    return %c0_i32, %c0_i32_0 : i32, i32
  }
  func.func @transform_6(%arg0: i32) -> (i32, i32) {
    %c0_i32 = arith.constant 0 : i32
    %c0_i32_0 = arith.constant 0 : i32
    %c0_i32_1 = arith.constant 0 : i32
    return %c0_i32, %c0_i32_0 : i32, i32
  }
  func.func @transform_7(%arg0: i32) -> (i32, i32) {
    %c0_i32 = arith.constant 0 : i32
    %c0_i32_0 = arith.constant 0 : i32
    return %c0_i32, %arg0 : i32, i32
  }
}

</mosaic_0001>

<bundles_post_ra>
// kernel: tpu_custom_call.1
= control target key start
LH: loop header
LB: loop body
LE: loop exit
PB: predicated region body
PF: predicated region fallthrough
CT: control target
= control target key end

     0   :  { %s1171_s0 = inlined_call_operand.hbm [shape: f32[8,256], index: 0, kind: input, shape index: {}]   ;;  %s1172_s1 = inlined_call_operand.hbm [shape: bf16[256,256], index: 1, kind: input, shape index: {}]   ;;  %s1173_s2 = inlined_call_operand.vmem [shape: f32[1,256], index: 2, kind: input, shape index: {}]   ;;  %s1174_s3 = inlined_call_operand.hbm [shape: bf16[256,256], index: 3, kind: input, shape index: {}]   ;;  %s1175_s4 = inlined_call_operand.vmem [shape: f32[1,256], index: 4, kind: input, shape index: {}]   ;;  %s1176_s5 = inlined_call_operand.vmem [shape: f32[1,256], index: 5, kind: input, shape index: {}]   ;;  %s1177_s6 = inlined_call_operand.<no memory space> [shape: f32[1,1], index: 6, kind: input, shape index: {}]   ;;  %s1178_s7 = inlined_call_operand.hbm [shape: f32[1,8], index: 7, kind: output, shape index: {}]  }
   0x1   :  { %v12_v0 = vstv %s1177_s6 }
   0x2   :  { %13 = vst [vmem:[#allocation2] sm:$0x1] %v12_v0 }
   0x3   :  { %14 = vsyncpa [#allocation4], 0 }
   0x4   :  { %15 = vsyncpa [#allocation7], 0 }
   0x5   :  { %16 = vsyncpa [#allocation5], 0  ;;  %s1020_s26 = smov [#allocation6]   ;;  %s926_s30 = scalar_lea.hbm %s1172_s1, 4096 }
   0x6   :  { %s32_s27 = sshll.u32 %s1020_s26, 4  ;;  %p927_p0 = scmp.ne.s32.totalorder %s1172_s1, %s926_s30  ;;  %s33_s27 = int_to_ptr.vmem [resolvable:$true] %s32_s27 }
   0x7   :  { %p930_p1 = scmp.lt.u32.totalorder %s926_s30, %s1172_s1 }
   0x9   :  { %p932_p2 = pnand %p930_p1, %p927_p0 }
   0xb   :  { %935 = shalt.err (!%p932_p2)
}
   0xc   :  { %s936_s6 = scalar_lea.vmem %s33_s27, 4096  ;;  %p941_p4 = scmp.lt.s32.totalorder %s33_s27, %s33_s27 }
   0xd   :  { %p937_p3 = scmp.ne.s32.totalorder %s33_s27, %s936_s6  ;;  %p942_p5 = scmp.lt.s32.totalorder %s936_s6, %s936_s6 }
   0xf   :  { %p943_p6 = por %p942_p5, %p941_p4 }
  0x11   :  { %p944_p7 = pnand %p943_p6, %p937_p3 }
  0x13   :  { %947 = shalt.err (!%p944_p7)
}
  0x14   :  { %s1021_s12 = smov 128   ;;  %s1022_s13 = smov 8  }
  0x15   :  { %38 = dma.hbm_to_vmem [thread:$0]  %s1172_s1, 4096, %s33_s27, [#allocation7], %s1021_s12, %s1021_s12, %s1022_s13  }
  0x16   :  { %s1023_s16 = smov [#allocation3]   ;;  %s1024_s18 = smov [#allocation8]  }
  0x17   :  { %s23_s17 = sshll.u32 %s1023_s16, 4  ;;  %s46_s19 = sshll.u32 %s1024_s18, 4  ;;  %s24_s17 = int_to_ptr.vmem [resolvable:$true] %s23_s17  ;;  %s47_s19 = int_to_ptr.vmem [resolvable:$true] %s46_s19 }
  0x18   :  { %s948_s22 = scalar_lea.hbm %s1171_s0, 256 }
  0x19   :  { %p949_p8 = scmp.ne.s32.totalorder %s1171_s0, %s948_s22  ;;  %p952_p9 = scmp.lt.u32.totalorder %s948_s22, %s1171_s0 }
  0x1b   :  { %p954_p10 = pnand %p952_p9, %p949_p8 }
  0x1d   :  { %957 = shalt.err (!%p954_p10)
}
  0x1e   :  { %s958_s1 = scalar_lea.vmem %s24_s17, 256  ;;  %p963_p12 = scmp.lt.s32.totalorder %s24_s17, %s24_s17 }
  0x1f   :  { %p959_p11 = scmp.ne.s32.totalorder %s24_s17, %s958_s1  ;;  %p964_p13 = scmp.lt.s32.totalorder %s958_s1, %s958_s1 }
  0x21   :  { %p965_p0 = por %p964_p13, %p963_p12 }
  0x23   :  { %p966_p1 = pnand %p965_p0, %p959_p11 }
  0x25   :  { %969 = shalt.err (!%p966_p1)
}
  0x26   :  { %26 = dma.hbm_to_vmem [thread:$0]  %s1171_s0, 256, %s24_s17, [#allocation4]  }
  0x27   :  { %s970_s8 = scalar_lea.hbm %s1174_s3, 4096 }
  0x28   :  { %p971_p2 = scmp.ne.s32.totalorder %s1174_s3, %s970_s8  ;;  %p974_p3 = scmp.lt.u32.totalorder %s970_s8, %s1174_s3 }
  0x2a   :  { %p976_p4 = pnand %p974_p3, %p971_p2 }
  0x2c   :  { %979 = shalt.err (!%p976_p4)
}
  0x2d   :  { %s980_s14 = scalar_lea.vmem %s47_s19, 4096  ;;  %p985_p6 = scmp.lt.s32.totalorder %s47_s19, %s47_s19 }
  0x2e   :  { %p981_p5 = scmp.ne.s32.totalorder %s47_s19, %s980_s14  ;;  %p986_p7 = scmp.lt.s32.totalorder %s980_s14, %s980_s14 }
  0x30   :  { %p987_p8 = por %p986_p7, %p985_p6 }
  0x32   :  { %p988_p9 = pnand %p987_p8, %p981_p5 }
  0x34   :  { %991 = shalt.err (!%p988_p9)
}
  0x35   :  { %52 = dma.hbm_to_vmem [thread:$0]  %s1174_s3, 4096, %s47_s19, [#allocation7], %s1021_s12, %s1021_s12, %s1022_s13  }
  0x36   :  { %1014 = dma.done.wait [#allocation4], 256  }
  0x37   :  { %1015 = vsyncadd [#allocation4], 4294967040 }
  0x38   :  { %1016 = dma.done.wait [#allocation7], 8192  }
  0x39   :  { %1017 = vsyncadd [#allocation7], 4294959104  ;;  %v826_v1 = vld [vmem:[#allocation6 + $0x4] ss:$8 sps:$4 sm:$0xff]   ;;  %v828_v2 = vld [vmem:[#allocation6] ss:$8 sps:$4 sm:$0xff]  }
  0x3a   :  { %276 = vmatprep.subr.bf16.mxu0 %v826_v1  ;;  %v829_v3 = vld [vmem:[#allocation6 + $0x14] ss:$8 sps:$4 sm:$0xff]   ;;  %v831_v4 = vld [vmem:[#allocation6 + $0x10] ss:$8 sps:$4 sm:$0xff]   ;;  %v832_v5 = vld [vmem:[#allocation6 + $0x24] ss:$8 sps:$4 sm:$0xff]  }
  0x3b   :  { %277 = vmatpush1.bf16.msra.mxu0 %v828_v2  ;;  %v834_v6 = vld [vmem:[#allocation6 + $0x20] ss:$8 sps:$4 sm:$0xff]   ;;  %v835_v7 = vld [vmem:[#allocation6 + $0x34] ss:$8 sps:$4 sm:$0xff]   ;;  %v837_v8 = vld [vmem:[#allocation6 + $0x30] ss:$8 sps:$4 sm:$0xff]  }
  0x3c   :  { %278 = vmatprep.subr.bf16.mxu0 %v829_v3  ;;  %v838_v9 = vld [vmem:[#allocation6 + $0x44] ss:$8 sps:$4 sm:$0xff]   ;;  %v840_v10 = vld [vmem:[#allocation6 + $0x40] ss:$8 sps:$4 sm:$0xff]   ;;  %v841_v11 = vld [vmem:[#allocation6 + $0x54] ss:$8 sps:$4 sm:$0xff]  }
  0x3d   :  { %v843_v12 = vld [vmem:[#allocation6 + $0x50] ss:$8 sps:$4 sm:$0xff]   ;;  %v844_v13 = vld [vmem:[#allocation6 + $0x64] ss:$8 sps:$4 sm:$0xff]   ;;  %v846_v14 = vld [vmem:[#allocation6 + $0x60] ss:$8 sps:$4 sm:$0xff]  }
  0x3e   :  { %v69_v15 = vld [vmem:[#allocation3 + $0x8] sm:$0xff]  ;;  %v874_v17 = vld [vmem:[#allocation8 + $0x4] ss:$8 sps:$4 sm:$0xff]   ;;  %v876_v18 = vld [vmem:[#allocation8] ss:$8 sps:$4 sm:$0xff]   ;;  %vm646_vm0 = vcmask 64512  }
  0x3f   :  { %279 = vmatpush1.bf16.msra.mxu0 %v831_v4  ;;  %v71_v16 = vpack.c.bf16 %v69_v15, %v69_v15  ;;  %v847_v19 = vld [vmem:[#allocation6 + $0x74] ss:$8 sps:$4 sm:$0xff]   ;;  %v849_v21 = vld [vmem:[#allocation6 + $0x70] ss:$8 sps:$4 sm:$0xff]   ;;  %525 = vmatprep.subr.bf16.mxu1 %v874_v17  ;;  %v880_v23 = vld [vmem:[#allocation8 + $0x24] ss:$8 sps:$4 sm:$0xff]  }
  0x40   :  { %280 = vmatprep.subr.bf16.mxu0 %v832_v5  ;;  %v877_v20 = vld [vmem:[#allocation8 + $0x14] ss:$8 sps:$4 sm:$0xff]   ;;  %526 = vmatpush1.bf16.msra.mxu1 %v876_v18  ;;  %v879_v22 = vld [vmem:[#allocation8 + $0x10] ss:$8 sps:$4 sm:$0xff]   ;;  %v850_v24 = vld [vmem:[#allocation6 + $0x84] ss:$8 sps:$4 sm:$0xff]   ;;  %v106_v5 = vlaneseq }
  0x41   :  { %308 = vmatprep.mubr.bf16.mxu0 %v71_v16  ;;  %527 = vmatprep.subr.bf16.mxu1 %v877_v20  ;;  %v852_v25 = vld [vmem:[#allocation6 + $0x80] ss:$8 sps:$4 sm:$0xff]   ;;  %v883_v27 = vld [vmem:[#allocation8 + $0x34] ss:$8 sps:$4 sm:$0xff]   ;;  %v855_v29 = vld [vmem:[#allocation6 + $0x90] ss:$8 sps:$4 sm:$0xff]  }
  0x42   :  { %v882_v26 = vld [vmem:[#allocation8 + $0x20] ss:$8 sps:$4 sm:$0xff]   ;;  %v853_v28 = vld [vmem:[#allocation6 + $0x94] ss:$8 sps:$4 sm:$0xff]   ;;  %v885_v30 = vld [vmem:[#allocation8 + $0x30] ss:$8 sps:$4 sm:$0xff]  }
  0x43   :  { %281 = vmatpush1.bf16.msra.mxu0 %v834_v6  ;;  %v886_v31 = vld [vmem:[#allocation8 + $0x44] ss:$8 sps:$4 sm:$0xff]   ;;  %v858_v33 = vld [vmem:[#allocation6 + $0xa0] ss:$8 sps:$4 sm:$0xff]   ;;  %v889_v35 = vld [vmem:[#allocation8 + $0x54] ss:$8 sps:$4 sm:$0xff]  }
  0x44   :  { %282 = vmatprep.subr.bf16.mxu0 %v835_v7  ;;  %528 = vmatpush1.bf16.msra.mxu1 %v879_v22  ;;  %v856_v32 = vld [vmem:[#allocation6 + $0xa4] ss:$8 sps:$4 sm:$0xff]   ;;  %v888_v34 = vld [vmem:[#allocation8 + $0x40] ss:$8 sps:$4 sm:$0xff]   ;;  %v859_v36 = vld [vmem:[#allocation6 + $0xb4] ss:$8 sps:$4 sm:$0xff]  }
  0x45   :  { %529 = vmatprep.subr.bf16.mxu1 %v880_v23  ;;  %v891_v37 = vld [vmem:[#allocation8 + $0x50] ss:$8 sps:$4 sm:$0xff]   ;;  %v892_v39 = vld [vmem:[#allocation8 + $0x64] ss:$8 sps:$4 sm:$0xff]   ;;  %v894_v41 = vld [vmem:[#allocation8 + $0x60] ss:$8 sps:$4 sm:$0xff]  }
  0x46   :  { %v861_v38 = vld [vmem:[#allocation6 + $0xb0] ss:$8 sps:$4 sm:$0xff]   ;;  %v862_v40 = vld [vmem:[#allocation6 + $0xc4] ss:$8 sps:$4 sm:$0xff]   ;;  %v864_v42 = vld [vmem:[#allocation6 + $0xc0] ss:$8 sps:$4 sm:$0xff]  }
  0x47   :  { %283 = vmatpush1.bf16.msra.mxu0 %v837_v8  ;;  %v895_v43 = vld [vmem:[#allocation8 + $0x74] ss:$8 sps:$4 sm:$0xff]   ;;  %v897_v45 = vld [vmem:[#allocation8 + $0x70] ss:$8 sps:$4 sm:$0xff]   ;;  %v898_v47 = vld [vmem:[#allocation8 + $0x84] ss:$8 sps:$4 sm:$0xff]  }
  0x48   :  { %284 = vmatprep.subr.bf16.mxu0 %v838_v9  ;;  %530 = vmatpush1.bf16.msra.mxu1 %v882_v26  ;;  %v865_v44 = vld [vmem:[#allocation6 + $0xd4] ss:$8 sps:$4 sm:$0xff]   ;;  %v867_v46 = vld [vmem:[#allocation6 + $0xd0] ss:$8 sps:$4 sm:$0xff]   ;;  %v868_v48 = vld [vmem:[#allocation6 + $0xe4] ss:$8 sps:$4 sm:$0xff]  }
  0x49   :  { %531 = vmatprep.subr.bf16.mxu1 %v883_v27  ;;  %v900_v49 = vld [vmem:[#allocation8 + $0x80] ss:$8 sps:$4 sm:$0xff]   ;;  %v901_v51 = vld [vmem:[#allocation8 + $0x94] ss:$8 sps:$4 sm:$0xff]   ;;  %v903_v53 = vld [vmem:[#allocation8 + $0x90] ss:$8 sps:$4 sm:$0xff]  }
  0x4a   :  { %v870_v50 = vld [vmem:[#allocation6 + $0xe0] ss:$8 sps:$4 sm:$0xff]   ;;  %v871_v52 = vld [vmem:[#allocation6 + $0xf4] ss:$8 sps:$4 sm:$0xff]   ;;  %v873_v54 = vld [vmem:[#allocation6 + $0xf0] ss:$8 sps:$4 sm:$0xff]  }
  0x4b   :  { %285 = vmatpush1.bf16.msra.mxu0 %v840_v10  ;;  %v68_v55 = vld [vmem:[#allocation3] sm:$0xff]  ;;  %v904_v56 = vld [vmem:[#allocation8 + $0xa4] ss:$8 sps:$4 sm:$0xff]   ;;  %v906_v58 = vld [vmem:[#allocation8 + $0xa0] ss:$8 sps:$4 sm:$0xff]   ;;  %v107_v6 = vshrl.u32 %v106_v5, 7 }
  0x4c   :  { %286 = vmatprep.subr.bf16.mxu0 %v841_v11  ;;  %532 = vmatpush1.bf16.msra.mxu1 %v885_v30  ;;  %v70_v57 = vpack.c.bf16 %v68_v55, %v68_v55  ;;  %v907_v59 = vld [vmem:[#allocation8 + $0xb4] ss:$8 sps:$4 sm:$0xff]   ;;  %v909_v60 = vld [vmem:[#allocation8 + $0xb0] ss:$8 sps:$4 sm:$0xff]   ;;  %v910_v61 = vld [vmem:[#allocation8 + $0xc4] ss:$8 sps:$4 sm:$0xff]  }
  0x4d   :  { %533 = vmatprep.subr.bf16.mxu1 %v886_v31  ;;  %v912_v62 = vld [vmem:[#allocation8 + $0xc0] ss:$8 sps:$4 sm:$0xff]   ;;  %v913_v63 = vld [vmem:[#allocation8 + $0xd4] ss:$8 sps:$4 sm:$0xff]   ;;  %v915_v0 = vld [vmem:[#allocation8 + $0xd0] ss:$8 sps:$4 sm:$0xff]  }
  0x4e   :  { %v916_v1 = vld [vmem:[#allocation8 + $0xe4] ss:$8 sps:$4 sm:$0xff]   ;;  %v918_v2 = vld [vmem:[#allocation8 + $0xe0] ss:$8 sps:$4 sm:$0xff]   ;;  %v919_v3 = vld [vmem:[#allocation8 + $0xf4] ss:$8 sps:$4 sm:$0xff]  }
  0x4f   :  { %287 = vmatpush1.bf16.msra.mxu0 %v843_v12  ;;  %v921_v4 = vld [vmem:[#allocation8 + $0xf0] ss:$8 sps:$4 sm:$0xff]   ;;  %v1112_v7 = vsub.s32 0, %v107_v6  ;;  %v112_v9 = vsub.s32 1, %v107_v6  ;;  %vm733_vm1 = vcmask 57344  }
  0x50   :  { %288 = vmatprep.subr.bf16.mxu0 %v844_v13  ;;  %534 = vmatpush1.bf16.msra.mxu1 %v888_v34  ;;  %v104_v8 = vld [vmem:[%s1173_s2] sm:$0x3] }
  0x51   :  { %535 = vmatprep.subr.bf16.mxu1 %v889_v35  ;;  %v109_v10 = vrot.slane %v104_v8, %v1112_v7  ;;  %v113_v11 = vrot.slane %v104_v8, %v112_v9  ;;  %v353_v22 = vld [vmem:[%s1175_s4] sm:$0x3]  ;;  %s1026_s4 = smov [#allocation9]  }
  0x52   :  { %v358_v23 = vrot.slane %v353_v22, %v1112_v7  ;;  %v716_v34 = vld [vmem:[#allocation2] sm:$0x1]  ;;  %v362_v35 = vrot.slane %v353_v22, %v112_v9 }
  0x53   :  { %289 = vmatpush1.bf16.msra.mxu0 %v846_v14 }
  0x54   :  { %290 = vmatprep.subr.bf16.mxu0 %v847_v19  ;;  %536 = vmatpush1.bf16.msra.mxu1 %v891_v37 }
  0x55   :  { %537 = vmatprep.subr.bf16.mxu1 %v892_v39 }
  0x57   :  { %291 = vmatpush1.bf16.msra.mxu0 %v849_v21 }
  0x58   :  { %292 = vmatprep.subr.bf16.mxu0 %v850_v24  ;;  %538 = vmatpush1.bf16.msra.mxu1 %v894_v41  ;;  %v568_v24 = vld [vmem:[%s1176_s5] sm:$0x3]  ;;  %s741_s5 = sshll.u32 %s1026_s4, 4  ;;  %s742_s5 = int_to_ptr.vmem [resolvable:$true] %s741_s5 }
  0x59   :  { %539 = vmatprep.subr.bf16.mxu1 %v895_v43  ;;  %s992_s18 = scalar_lea.vmem %s742_s5, 16  ;;  %s996_s19 = scalar_lea.vmem %s742_s5, 32 }
  0x5a   :  { %p993_p10 = scmp.ne.s32.totalorder %s742_s5, %s992_s18  ;;  %p997_p11 = scmp.lt.s32.totalorder %s742_s5, %s742_s5 }
  0x5b   :  { %293 = vmatpush1.bf16.msra.mxu0 %v852_v25  ;;  %p998_p12 = scmp.lt.s32.totalorder %s996_s19, %s992_s18 }
  0x5c   :  { %294 = vmatprep.subr.bf16.mxu0 %v853_v28  ;;  %540 = vmatpush1.bf16.msra.mxu1 %v897_v45  ;;  %v573_v28 = vrot.slane %v568_v24, %v1112_v7 }
  0x5d   :  { %541 = vmatprep.subr.bf16.mxu1 %v898_v47  ;;  %p999_p13 = por %p998_p12, %p997_p11 }
  0x5f   :  { %295 = vmatpush1.bf16.msra.mxu0 %v855_v29  ;;  %p1000_p0 = pnand %p999_p13, %p993_p10 }
  0x60   :  { %296 = vmatprep.subr.bf16.mxu0 %v856_v32  ;;  %542 = vmatpush1.bf16.msra.mxu1 %v900_v49 }
  0x61   :  { %543 = vmatprep.subr.bf16.mxu1 %v901_v51 }
  0x63   :  { %297 = vmatpush1.bf16.msra.mxu0 %v858_v33  ;;  %v1025_v33 = vmov 0  }
  0x64   :  { %298 = vmatprep.subr.bf16.mxu0 %v859_v36  ;;  %544 = vmatpush1.bf16.msra.mxu1 %v903_v53 }
  0x65   :  { %545 = vmatprep.subr.bf16.mxu1 %v904_v56  ;;  %824 = vset.pattern.permute.xlu1 %v1025_v33 }
  0x66   :  { %719 = vperm.xlu1 %824, %v716_v34  }
  0x67   :  { %299 = vmatpush1.bf16.msra.mxu0 %v861_v38  ;;  %v577_v38 = vrot.slane %v568_v24, %v112_v9 }
  0x68   :  { %300 = vmatprep.subr.bf16.mxu0 %v862_v40  ;;  %546 = vmatpush1.bf16.msra.mxu1 %v906_v58 }
  0x69   :  { %547 = vmatprep.subr.bf16.mxu1 %v907_v59 }
  0x6b   :  { %301 = vmatpush1.bf16.msra.mxu0 %v864_v42 }
  0x6c   :  { %302 = vmatprep.subr.bf16.mxu0 %v865_v44  ;;  %548 = vmatpush1.bf16.msra.mxu1 %v909_v60 }
  0x6d   :  { %549 = vmatprep.subr.bf16.mxu1 %v910_v61 }
  0x6f   :  { %303 = vmatpush1.bf16.msra.mxu0 %v867_v46 }
  0x70   :  { %304 = vmatprep.subr.bf16.mxu0 %v868_v48  ;;  %550 = vmatpush1.bf16.msra.mxu1 %v912_v62 }
  0x71   :  { %551 = vmatprep.subr.bf16.mxu1 %v913_v63 }
  0x73   :  { %305 = vmatpush1.bf16.msra.mxu0 %v870_v50 }
  0x74   :  { %306 = vmatprep.subr.bf16.mxu0 %v871_v52  ;;  %552 = vmatpush1.bf16.msra.mxu1 %v915_v0 }
  0x75   :  { %553 = vmatprep.subr.bf16.mxu1 %v916_v1 }
  0x77   :  { %307 = vmatpush1.bf16.msra.mxu0 %v873_v54 }
  0x78   :  { %554 = vmatpush1.bf16.msra.mxu1 %v918_v2 }
  0x79   :  { %555 = vmatprep.subr.bf16.mxu1 %v919_v3 }
  0x7a   :  { %309 = vmatmul.mubr.bf16.vlgmr.msra.gmra.mrb[0].mxu0 %v70_v57 }
  0x7c   :  { %556 = vmatpush1.bf16.msra.mxu1 %v921_v4 }
 0x14d   :  { %v310_v12 = vpop.f32.mrb[0].mxu0 }
 0x14e   :  { %v311_v13 = vadd.f32 %v310_v12, %v109_v10  ;;  %v312_v14 = vpop.f32.mrb[1].mxu0 }
 0x14f   :  { %v313_v15 = vadd.f32 %v312_v14, %v113_v11  ;;  %v314_v16 = vpop.f32.mrb[2].mxu0 }
 0x150   :  { %v317_v17 = vmax.f32 %v311_v13, 0.0  ;;  %v315_v18 = vpop.f32.mrb[3].mxu0 }
 0x151   :  { %v318_v19 = vmax.f32 %v313_v15, 0.0 }
 0x152   :  { %v319_v21 = vpack.c.bf16 %v317_v17, %v317_v17 }
 0x153   :  { %v320_v20 = vpack.c.bf16 %v318_v19, %v318_v19 }
 0x155   :  { %557 = vmatprep.mubr.bf16.mxu1 %v320_v20 }
 0x156   :  { %558 = vmatmul.mubr.bf16.vlgmr.msra.gmra.mrb[0].mxu1 %v319_v21 }
 0x229   :  { %v559_v25 = vpop.f32.mrb[0].mxu1 }
 0x22a   :  { %v560_v26 = vadd.f32 %v559_v25, %v358_v23  ;;  %v561_v27 = vpop.f32.mrb[1].mxu1 }
 0x22b   :  { %v563_v29 = vpop.f32.mrb[2].mxu1  ;;  %v562_v36 = vadd.f32 %v561_v27, %v362_v35 }
 0x22c   :  { %v566_v30 = vmax.f32 %v560_v26, 0.0  ;;  %v564_v31 = vpop.f32.mrb[3].mxu1 }
 0x22d   :  { %v567_v37 = vmax.f32 %v562_v36, 0.0 }
 0x22e   :  { %v580_v32 = vmul.f32 %v573_v28, %v566_v30 }
 0x22f   :  { %v581_v39 = vmul.f32 %v577_v38, %v567_v37 }
 0x230   :  { %582 = vxpose.xlu0.b32.start.end [1/1] (short) %v580_v32, 128 }
 0x26d   :  { %614 = vxpose.xlu0.b32.start.end [1/1] (short) %v581_v39, 128 }
 0x296   :  { %825 = vset.pattern.permute.xlu0 %v1025_v33 }
 0x2b0   :  { %v598_v40 = vpop.trf.xlu0 }
 0x2b1   :  { %v647_v58 = vsel %vm646_vm0, %v598_v40, 0.0 }
 0x2b4   :  { %v599_v41 = vpop.trf.xlu0 }
 0x2b5   :  { %v648_v56 = vsel %vm646_vm0, %v599_v41, 0.0 }
 0x2b6   :  { %v649_v60 = vadd.f32 %v648_v56, %v647_v58 }
 0x2b8   :  { %v600_v42 = vpop.trf.xlu0 }
 0x2b9   :  { %v650_v59 = vsel %vm646_vm0, %v600_v42, 0.0 }
 0x2ba   :  { %v651_v62 = vadd.f32 %v650_v59, %v649_v60 }
 0x2bc   :  { %v601_v43 = vpop.trf.xlu0 }
 0x2bd   :  { %v652_v61 = vsel %vm646_vm0, %v601_v43, 0.0 }
 0x2be   :  { %v653_v1 = vadd.f32 %v652_v61, %v651_v62 }
 0x2c0   :  { %v602_v44 = vpop.trf.xlu0 }
 0x2c1   :  { %v654_v0 = vsel %vm646_vm0, %v602_v44, 0.0 }
 0x2c2   :  { %v655_v3 = vadd.f32 %v654_v0, %v653_v1 }
 0x2c4   :  { %v603_v45 = vpop.trf.xlu0 }
 0x2c5   :  { %v656_v2 = vsel %vm646_vm0, %v603_v45, 0.0 }
 0x2c6   :  { %v657_v6 = vadd.f32 %v656_v2, %v655_v3 }
 0x2c8   :  { %v604_v46 = vpop.trf.xlu0 }
 0x2c9   :  { %v658_v5 = vsel %vm646_vm0, %v604_v46, 0.0 }
 0x2ca   :  { %v659_v9 = vadd.f32 %v658_v5, %v657_v6 }
 0x2cc   :  { %v605_v47 = vpop.trf.xlu0 }
 0x2cd   :  { %v660_v8 = vsel %vm646_vm0, %v605_v47, 0.0 }
 0x2ce   :  { %v661_v12 = vadd.f32 %v660_v8, %v659_v9 }
 0x2d0   :  { %v606_v48 = vpop.trf.xlu0 }
 0x2d1   :  { %v662_v11 = vsel %vm646_vm0, %v606_v48, 0.0 }
 0x2d2   :  { %v663_v14 = vadd.f32 %v662_v11, %v661_v12  ;;  %v720_v12 = vpop.permute.xlu1 %719 }
 0x2d4   :  { %v607_v49 = vpop.trf.xlu0 }
 0x2d5   :  { %v664_v13 = vsel %vm646_vm0, %v607_v49, 0.0 }
 0x2d6   :  { %v665_v17 = vadd.f32 %v664_v13, %v663_v14 }
 0x2d8   :  { %v608_v50 = vpop.trf.xlu0 }
 0x2d9   :  { %v666_v16 = vsel %vm646_vm0, %v608_v50, 0.0 }
 0x2da   :  { %v667_v19 = vadd.f32 %v666_v16, %v665_v17 }
 0x2dc   :  { %v609_v51 = vpop.trf.xlu0 }
 0x2dd   :  { %v668_v18 = vsel %vm646_vm0, %v609_v51, 0.0 }
 0x2de   :  { %v669_v22 = vadd.f32 %v668_v18, %v667_v19 }
 0x2e0   :  { %v610_v52 = vpop.trf.xlu0 }
 0x2e1   :  { %v670_v21 = vsel %vm646_vm0, %v610_v52, 0.0 }
 0x2e2   :  { %v671_v24 = vadd.f32 %v670_v21, %v669_v22 }
 0x2e4   :  { %v611_v53 = vpop.trf.xlu0 }
 0x2e5   :  { %v672_v23 = vsel %vm646_vm0, %v611_v53, 0.0 }
 0x2e6   :  { %v673_v27 = vadd.f32 %v672_v23, %v671_v24 }
 0x2e8   :  { %v612_v54 = vpop.trf.xlu0 }
 0x2e9   :  { %v674_v26 = vsel %vm646_vm0, %v612_v54, 0.0 }
 0x2ea   :  { %v675_v29 = vadd.f32 %v674_v26, %v673_v27 }
 0x2ec   :  { %v613_v55 = vpop.trf.xlu0 }
 0x2ed   :  { %v676_v28 = vsel %vm646_vm0, %v613_v55, 0.0 }
 0x2ee   :  { %v677_v32 = vadd.f32 %v676_v28, %v675_v29 }
 0x2f0   :  { %v630_v57 = vpop.trf.xlu0 }
 0x2f1   :  { %v678_v31 = vsel %vm646_vm0, %v630_v57, 0.0 }
 0x2f2   :  { %v679_v34 = vadd.f32 %v678_v31, %v677_v32 }
 0x2f4   :  { %v631_v63 = vpop.trf.xlu0 }
 0x2f5   :  { %v680_v33 = vsel %vm646_vm0, %v631_v63, 0.0 }
 0x2f6   :  { %v681_v37 = vadd.f32 %v680_v33, %v679_v34 }
 0x2f8   :  { %v632_v4 = vpop.trf.xlu0 }
 0x2f9   :  { %v682_v36 = vsel %vm646_vm0, %v632_v4, 0.0 }
 0x2fa   :  { %v683_v39 = vadd.f32 %v682_v36, %v681_v37 }
 0x2fc   :  { %v633_v10 = vpop.trf.xlu0 }
 0x2fd   :  { %v684_v38 = vsel %vm646_vm0, %v633_v10, 0.0 }
 0x2fe   :  { %v685_v42 = vadd.f32 %v684_v38, %v683_v39 }
 0x300   :  { %v634_v15 = vpop.trf.xlu0 }
 0x301   :  { %v686_v41 = vsel %vm646_vm0, %v634_v15, 0.0  ;;  %v725_v15 = vrot.slane %v720_v12, %v1112_v7 }
 0x302   :  { %v687_v44 = vadd.f32 %v686_v41, %v685_v42 }
 0x304   :  { %v635_v20 = vpop.trf.xlu0 }
 0x305   :  { %v688_v43 = vsel %vm646_vm0, %v635_v20, 0.0 }
 0x306   :  { %v689_v47 = vadd.f32 %v688_v43, %v687_v44 }
 0x308   :  { %v636_v25 = vpop.trf.xlu0 }
 0x309   :  { %v690_v46 = vsel %vm646_vm0, %v636_v25, 0.0 }
 0x30a   :  { %v691_v49 = vadd.f32 %v690_v46, %v689_v47 }
 0x30c   :  { %v637_v30 = vpop.trf.xlu0 }
 0x30d   :  { %v692_v48 = vsel %vm646_vm0, %v637_v30, 0.0 }
 0x30e   :  { %v693_v52 = vadd.f32 %v692_v48, %v691_v49 }
 0x310   :  { %v638_v35 = vpop.trf.xlu0 }
 0x311   :  { %v694_v51 = vsel %vm646_vm0, %v638_v35, 0.0 }
 0x312   :  { %v695_v54 = vadd.f32 %v694_v51, %v693_v52 }
 0x314   :  { %v639_v40 = vpop.trf.xlu0 }
 0x315   :  { %v696_v53 = vsel %vm646_vm0, %v639_v40, 0.0 }
 0x316   :  { %v697_v57 = vadd.f32 %v696_v53, %v695_v54 }
 0x318   :  { %v640_v45 = vpop.trf.xlu0 }
 0x319   :  { %v698_v56 = vsel %vm646_vm0, %v640_v45, 0.0 }
 0x31a   :  { %v699_v59 = vadd.f32 %v698_v56, %v697_v57 }
 0x31c   :  { %v641_v50 = vpop.trf.xlu0 }
 0x31d   :  { %v700_v58 = vsel %vm646_vm0, %v641_v50, 0.0 }
 0x31e   :  { %v701_v62 = vadd.f32 %v700_v58, %v699_v59 }
 0x320   :  { %v642_v55 = vpop.trf.xlu0 }
 0x321   :  { %v702_v61 = vsel %vm646_vm0, %v642_v55, 0.0 }
 0x322   :  { %v703_v0 = vadd.f32 %v702_v61, %v701_v62 }
 0x324   :  { %v643_v60 = vpop.trf.xlu0 }
 0x325   :  { %v704_v63 = vsel %vm646_vm0, %v643_v60, 0.0 }
 0x326   :  { %v705_v3 = vadd.f32 %v704_v63, %v703_v0 }
 0x328   :  { %v644_v1 = vpop.trf.xlu0 }
 0x329   :  { %v706_v2 = vsel %vm646_vm0, %v644_v1, 0.0 }
 0x32a   :  { %v707_v4 = vadd.f32 %v706_v2, %v705_v3 }
 0x32c   :  { %v645_v5 = vpop.trf.xlu0 }
 0x32d   :  { %v708_v6 = vsel %vm646_vm0, %v645_v5, 0.0 }
 0x32e   :  { %v709_v8 = vadd.f32 %v708_v6, %v707_v4 }
 0x330   :  { %v710_v9 = vrot.slane %v709_v8, 4 }
 0x332   :  { %v711_v10 = vadd.f32 %v710_v9, %v709_v8 }
 0x334   :  { %v712_v11 = vrot.slane %v711_v10, 2 }
 0x336   :  { %v713_v13 = vadd.f32 %v712_v11, %v711_v10 }
 0x338   :  { %v714_v14 = vrot.slane %v713_v13, 1 }
 0x33a   :  { %v715_v16 = vadd.f32 %v714_v14, %v713_v13 }
 0x33c   :  { %v726_v17 = vadd.f32 %v725_v15, %v715_v16 }
 0x33e   :  { %v815_v18 = vmul.f32 -1.442695, %v726_v17 }
 0x340   :  { %922 = vpow2.f32 %v815_v18 }
 0x34a   :  { %v923_v19 = vpop.eup %922 }
 0x34b   :  { %v730_v20 = vadd.f32 1.0, %v923_v19 }
 0x34d   :  { %924 = vrcp.f32 %v730_v20 }
 0x357   :  { %v925_v21 = vpop.eup %924 }
 0x358   :  { %734 = vst.msk [vmem:[#allocation9] sm:$0x1] %vm733_vm1, %v925_v21 }
 0x359   :  { %1003 = shalt.err (!%p1000_p0)
}
 0x35a   :  { %s1004_s22 = scalar_lea.hbm %s1178_s7, 16 }
 0x35b   :  { %p1005_p1 = scmp.ne.s32.totalorder %s1178_s7, %s1004_s22  ;;  %p1008_p2 = scmp.lt.u32.totalorder %s1004_s22, %s1178_s7 }
 0x35d   :  { %p1010_p3 = pnand %p1008_p2, %p1005_p1 }
 0x35f   :  { %1013 = shalt.err (!%p1010_p3)
}
 0x360   :  { %744 = dma.vmem_to_hbm [thread:$0]  %s742_s5, 16, %s1178_s7, [#allocation5]  }
 0x361   :  { %1018 = dma.done.wait [#allocation5], 16  }
 0x362   :  { %1019 = vsyncadd [#allocation5], 4294967280 }
 0x363   :  { %748 = vsyncpa [#allocation4], 1 }
 0x364   :  { %749 = vsyncpa [#allocation7], 1 }
 0x365   :  { %750 = vsyncpa [#allocation5], 1 }

</bundles_post_ra>
